<compile_context>
chip_gen: v7x
topology: tpu7x:2x2x1
jax: 0.10.0
libtpu: 0.0.40
codegen_flags: <defaults>
</compile_context>

<pallas_src>
import functools

import jax
import jax.numpy as jnp
from jax.experimental import pallas as pl
from jax.experimental.pallas import tpu as pltpu


def _linear_disentangle_kernel(z_ref, wf_ref, bias_ref, out_ref):
    # One fused, lane-dense matmul per batch tile: (TB, in) @ (in, in+2*out).
    acc = jnp.dot(z_ref[...], wf_ref[...], preferred_element_type=jnp.float32)
    out_ref[...] = (acc + bias_ref[...]).astype(out_ref.dtype)


def prepare_linear_disentangle(w_dec, w_rev, b_rev, operand_dtype):
    """Build the fused weight / bias (f32 math, cast at the matmul boundary).

    For static weights this should be computed once and reused across forwards
    rather than re-run on every call.
    """
    out_dim, in_dim = w_dec.shape
    w32 = w_dec.astype(jnp.float32)
    wr32 = w_rev.astype(jnp.float32)

    nrm = w32 @ w32.T                                   # (out, out), SPD
    proj = jnp.linalg.solve(nrm, w32)                   # (out, in)
    q = jnp.eye(in_dim, dtype=jnp.float32) - w32.T @ proj   # (in, in)
    r = q @ wr32.T                                      # (in, out)

    w_fused = jnp.concatenate([w32.T, q, r], axis=1)    # (in, out + in + out)
    bias_full = jnp.concatenate(
        [jnp.zeros((out_dim + in_dim,), jnp.float32), b_rev.astype(jnp.float32)]
    ).reshape(1, out_dim + in_dim + out_dim)            # kept f32 (added post-MXU)

    return w_fused.astype(operand_dtype), bias_full


def linear_disentangle(z, w_dec, w_rev, b_rev, *, tile_b=None):
    """Forward of LinearDisentangle(in_dim, out_dim, bias=False, reversal='linear')."""
    B, in_dim = z.shape
    out_dim = w_dec.shape[0]
    total_dim = out_dim + in_dim + out_dim
    dtype = z.dtype
    itemsize = jnp.dtype(dtype).itemsize

    # --- wrapper-side algebra (tiny, f32) ------------------------------------
    w_fused, bias_full = prepare_linear_disentangle(w_dec, w_rev, b_rev, dtype)

    # --- batch tiling ---------------------------------------------------------
    sublane = {4: 8, 2: 16, 1: 32}.get(itemsize, 8)
    if B <= sublane:
        tile_b = B                                       # single full-extent block
    else:
        if tile_b is None:
            # Target ~3 MB of HBM traffic (z in + fused out) per grid step.
            row_bytes = (in_dim + total_dim) * itemsize
            tile_b = (int((3 << 20) // max(row_bytes, 1)) // sublane) * sublane
        tile_b = max(sublane, (int(tile_b) // sublane) * sublane)
        # Guarantee >= 2 grid steps: enables DMA/compute overlap and lets the
        # "parallel" batch axis shard across both v7x TensorCores.
        half = (((B + 1) // 2) + sublane - 1) // sublane * sublane
        tile_b = min(tile_b, half)
    grid = (pl.cdiv(B, tile_b),)

    # --- VMEM budget: double-buffered z/out tiles + resident fused weight -----
    est = itemsize * (2 * tile_b * (in_dim + total_dim) + in_dim * total_dim) \
        + 4 * total_dim
    vmem_limit = int(min(max(2 * est, 32 << 20), 48 << 20))   # headroom under 64 MiB (v7x)

    cost = pl.CostEstimate(
        flops=2 * B * in_dim * total_dim,
        transcendentals=0,
        bytes_accessed=(B * (in_dim + total_dim) + in_dim * total_dim) * itemsize
        + 4 * total_dim,
    )

    fused_out = pl.pallas_call(
        _linear_disentangle_kernel,
        out_shape=jax.ShapeDtypeStruct((B, total_dim), dtype),
        grid=grid,
        in_specs=[
            pl.BlockSpec((tile_b, in_dim), lambda i: (i, 0)),      # z (batch-tiled)
            pl.BlockSpec((in_dim, total_dim), lambda i: (0, 0)),   # W_fused (resident)
            pl.BlockSpec((1, total_dim), lambda i: (0, 0)),        # bias (resident)
        ],
        out_specs=pl.BlockSpec((tile_b, total_dim), lambda i: (i, 0)),
        compiler_params=pltpu.CompilerParams(
            dimension_semantics=("parallel",),
            vmem_limit_bytes=vmem_limit,
        ),
        cost_estimate=cost,
    )(z, w_fused, bias_full)

    # Slice the lane-dense fused output back into the module's dict (wrapper-side).
    x = fused_out[:, :out_dim]
    z_null = fused_out[:, out_dim:out_dim + in_dim]
    gr = fused_out[:, out_dim + in_dim:]
    return {"v": x, "mu_null": z_null, "gr": gr}


if __name__ == "__main__":
    # Small but tile-able shapes: batch=256 (2 tiles of 128), in=128, out=64.
    B, in_dim, out_dim = 256, 128, 64

    key = jax.random.PRNGKey(0)
    kz, kw, kwr, kbr = jax.random.split(key, 4)

    bound = 1.0 / jnp.sqrt(jnp.float32(in_dim))
    z = jax.random.normal(kz, (B, in_dim), dtype=jnp.float32)
    w_dec = jax.random.uniform(kw, (out_dim, in_dim), jnp.float32, -bound, bound)
    w_rev = jax.random.uniform(kwr, (out_dim, in_dim), jnp.float32, -bound, bound)
    b_rev = jax.random.uniform(kbr, (out_dim,), jnp.float32, -bound, bound)

    out = linear_disentangle(z, w_dec, w_rev, b_rev, tile_b=128)
    jax.block_until_ready(out)

    # Pure-JAX reference mirroring the PyTorch forward exactly.
    x_ref = z @ w_dec.T
    nrm = w_dec @ w_dec.T
    znull_ref = z - jnp.linalg.solve(nrm, x_ref.T).T @ w_dec
    gr_ref = znull_ref @ w_rev.T + b_rev

    assert jnp.allclose(out["v"], x_ref, atol=1e-4)
    assert jnp.allclose(out["mu_null"], znull_ref, atol=1e-4)
    assert jnp.allclose(out["gr"], gr_ref, atol=1e-4)

    print("KERNEL_OK")
</pallas_src>

<mosaic_0001>
module attributes {stable_mosaic.version = 11 : i64} {
  func.func @_linear_disentangle_kernel(%arg0: i32, %arg1: memref<128x128xf32, #tpu.memory_space<vmem>>, %arg2: memref<128x256xf32, #tpu.memory_space<vmem>>, %arg3: memref<1x256xf32, #tpu.memory_space<vmem>>, %arg4: memref<128x256xf32, #tpu.memory_space<vmem>>) attributes {dimension_semantics = [#tpu.dimension_semantics<parallel>], iteration_bounds = array<i64: 2>, scalar_prefetch = 0 : i64, scratch_operands = 0 : i64, tpu.core_type = #tpu.core_type<tc>, window_params = [{transform_indices = @transform_0, window_bounds = array<i64: 128, 128>}, {pipeline_mode = #tpu.pipeline_mode<synchronous>, transform_indices = @transform_1, window_bounds = array<i64: 128, 256>}, {pipeline_mode = #tpu.pipeline_mode<synchronous>, transform_indices = @transform_2, window_bounds = array<i64: 1, 256>}, {transform_indices = @transform_3, window_bounds = array<i64: 128, 256>}]} {
    %c0 = arith.constant 0 : index
    %c0_0 = arith.constant 0 : index
    %0 = vector.load %arg1[%c0, %c0_0] : memref<128x128xf32, #tpu.memory_space<vmem>>, vector<128x128xf32>
    %c0_1 = arith.constant 0 : index
    %c0_2 = arith.constant 0 : index
    %1 = vector.load %arg2[%c0_1, %c0_2] : memref<128x256xf32, #tpu.memory_space<vmem>>, vector<128x256xf32>
    %cst = arith.constant dense<0.000000e+00> : vector<128x256xf32>
    %2 = tpu.matmul %0, %1, %cst {dimension_numbers = #tpu.dot_dimension_numbers<[1], [0], [0], [1], [0, 0, 1, 1], [], []>} : vector<128x128xf32>, vector<128x256xf32>, vector<128x256xf32> -> vector<128x256xf32>
    %c0_3 = arith.constant 0 : index
    %c0_4 = arith.constant 0 : index
    %3 = vector.load %arg3[%c0_3, %c0_4] : memref<1x256xf32, #tpu.memory_space<vmem>>, vector<1x256xf32>
    %4 = vector.broadcast %3 : vector<1x256xf32> to vector<128x256xf32>
    %5 = arith.addf %2, %4 : vector<128x256xf32>
    %c0_5 = arith.constant 0 : index
    %c0_6 = arith.constant 0 : index
    %6 = vector.load %arg4[%c0_5, %c0_6] : memref<128x256xf32, #tpu.memory_space<vmem>>, vector<128x256xf32>
    tpu.vector_store %arg4[%c0_5, %c0_6], %5 {strides = array<i32>} : memref<128x256xf32, #tpu.memory_space<vmem>>, vector<128x256xf32>,
    return
  }
  func.func @transform_0(%arg0: i32) -> (i32, i32) {
    %c0_i32 = arith.constant 0 : i32
    %c0_i32_0 = arith.constant 0 : i32
    return %arg0, %c0_i32 : i32, i32
  }
  func.func @transform_1(%arg0: i32) -> (i32, i32) {
    %c0_i32 = arith.constant 0 : i32
    %c0_i32_0 = arith.constant 0 : i32
    %c0_i32_1 = arith.constant 0 : i32
    return %c0_i32, %c0_i32_0 : i32, i32
  }
  func.func @transform_2(%arg0: i32) -> (i32, i32) {
    %c0_i32 = arith.constant 0 : i32
    %c0_i32_0 = arith.constant 0 : i32
    %c0_i32_1 = arith.constant 0 : i32
    return %c0_i32, %c0_i32_0 : i32, i32
  }
  func.func @transform_3(%arg0: i32) -> (i32, i32) {
    %c0_i32 = arith.constant 0 : i32
    %c0_i32_0 = arith.constant 0 : i32
    return %arg0, %c0_i32 : i32, i32
  }
}

</mosaic_0001>

<bundles_post_ra>
// kernel: tpu_custom_call.1
= control target key start
LH: loop header
LB: loop body
LE: loop exit
PB: predicated region body
PF: predicated region fallthrough
CT: control target
= control target key end

     0   :  { %8 = vsyncpa [#allocation3], 0  ;;  %s1159_s0 = inlined_call_operand.hbm [shape: f32[256,128], index: 0, kind: input, shape index: {}]   ;;  %s1160_s1 = inlined_call_operand.hbm [shape: f32[128,256], index: 1, kind: input, shape index: {}]   ;;  %s1161_s2 = inlined_call_operand.vmem [shape: f32[1,256], index: 2, kind: input, shape index: {}]   ;;  %s1162_s3 = inlined_call_operand.hbm [shape: f32[256,256], index: 3, kind: output, shape index: {}]  }
   0x1   :  { %10 = vsyncpa [#allocation3 + $0x1], 0 }
   0x2   :  { %11 = vsyncpa [#allocation6], 0 }
   0x3   :  { %12 = vsyncpa [#allocation4], 0 }
   0x4   :  { %14 = vsyncpa [#allocation4 + $0x1], 0  ;;  %s849_s12 = smov 0   ;;  %s851_s13 = smov 0  }
   0x5   :  { %s853_s14 = smov 0   ;;  %s855_s15 = smov 0  }
   0x6 LB: > { %s870_s16 = sadd.s32 4294967295, %s817_s15   ;;  %s557_s17 = sadd.s32 4294967294, %s817_s15   ;;  %s817_s15 = sphi %s855_s15, %s1182_s15   ;;  %s813_s14 = sphi %s853_s14, %s1181_s14   ;;  %s809_s13 = sphi %s851_s13, %s1180_s13   ;;  %s805_s12 = sphi %s849_s12, %s1179_s12  }
   0x7   : > { %p40_p0 = scmp.ne.s32.totalorder %s809_s13, %s805_s12  ;;  %p1163_p1 = scmp.eq.s32.totalorder %s870_s16, 0 }
   0x8   : > { %p112_p3 = scmp.eq.s32.totalorder %s557_s17, 1  ;;  %p558_p5 = scmp.ge.s32.totalorder %s817_s15, 1 }
   0x9   : > { %p879_p4 = por %p1163_p1, %p40_p0  ;;  %p119_p7 = scmp.lt.s32.totalorder %s817_s15, 3 }
   0xa   : > { %p884_p6 = por %p112_p3, %p40_p0  ;;  %s819_s21 = smov [#allocation5]  }
   0xb   : > { %s1166_s18 = scalar_select %p879_p4, 1, 0 }
   0xc   : > { %s1167_s19 = scalar_select %p884_p6, 1, 0 }
   0xd   : > { %p889_p8 = pnand %p558_p5, %p119_p7  ;;  %s131_s22 = sshll.u32 %s819_s21, 4  ;;  %s893_s22 = int_to_ptr.vmem [resolvable:$true] %s131_s22 }
   0xe   : > { %s905_s24 = sadd.s32 1, %s817_s15   ;;  %s27_s25 = sadd.s32 1, %s813_s14 }
   0xf   : > { %s1168_s20 = scalar_select %p889_p8, 1, 0 }
  0x10   : > { %p633_p9 = pneg %p889_p8  ;;  %s24_s26 = ssub.s32 %s817_s15, %s905_s24 }
  0x11   : > { %s689_s29 = scalar_lea.hbm %s1160_s1, 4096 }
  0x12   : > { %p900_p11 = pnand %p633_p9, %p1163_p1  ;;  %p690_p12 = scmp.ne.s32.totalorder %s1160_s1, %s689_s29 }
  0x13   : > { %p696_p5 = scmp.lt.u32.totalorder %s689_s29, %s1160_s1 }
  0x14   : > { %p691_p13 = pneg %p900_p11 }
  0x16   : > { %p692_p0 = pnand %p691_p13, %p690_p12 }
  0x18   : > { %p693_p3 = pneg %p692_p0 }
  0x1a   : > { %p698_p7 = pnand %p696_p5, %p693_p3 }
  0x1c   : > { %701 = shalt.err (!%p698_p7)
}
  0x1d   : > { %s702_s7 = scalar_lea.vmem %s893_s22, 4096  ;;  %p710_p2 = scmp.lt.s32.totalorder %s893_s22, %s893_s22 }
  0x1e   : > { %p703_p9 = scmp.ne.s32.totalorder %s893_s22, %s702_s7  ;;  %p711_p6 = scmp.lt.s32.totalorder %s702_s7, %s702_s7 }
  0x20   : > { %p705_p10 = pnand %p703_p9, %p691_p13  ;;  %p712_p4 = por %p711_p6, %p710_p2 }
  0x22   : > { %p706_p1 = pneg %p705_p10 }
  0x24   : > { %p713_p8 = pnand %p712_p4, %p706_p1 }
  0x26   : > { %716 = shalt.err (!%p713_p8)
}
  0x27   : > { %s820_s8 = smov 256   ;;  %s821_s9 = smov 16  }
  0x28   : > { %636 = dma.hbm_to_vmem [thread:$0]  (!%p900_p11), %s1160_s1, 4096, %s893_s22, [#allocation6], %s820_s8, %s820_s8, %s821_s9  }
  0x29   : > { %p25_p2 = scmp.eq.s32.totalorder %s24_s26, 0  ;;  %p34_p1 = scmp.ne.s32.totalorder %s813_s14, %s809_s13 }
  0x2a   : > { %p35_p4 = scmp.eq.s32.totalorder %s817_s15, 0  ;;  %p646_p6 = scmp.lt.s32.totalorder %s817_s15, 2 }
  0x2b   : > { %s936_s17 = scalar_select %p25_p2, %s813_s14, %s27_s25  }
  0x2c   : > { %p36_p8 = por %p35_p4, %p34_p1  ;;  %p1170_p10 = scmp.eq.s32.totalorder %s870_s16, 1 }
  0x2d   : > { %s148_s27 = sand.u32 1, %s813_s14   ;;  %s574_s28 = sshll.u32 %s817_s15, 11 }
  0x2e   : > { %p940_p12 = por %p1170_p10, %p34_p1  ;;  %s561_s29 = sshll.u32 %s148_s27, 7 }
  0x2f   : > { %s949_s4 = scalar_lea.hbm %s1159_s0, %s574_s28  ;;  %s152_s22 = scalar_lea.vmem [#allocation2], %s561_s29 }
  0x30   : > { %s159_s25 = sshll.u32 %s152_s22, 4  ;;  %p951_p11 = pnand %p646_p6, %p36_p8  ;;  %s955_s25 = int_to_ptr.vmem [resolvable:$true] %s159_s25 }
  0x31   : > { %s957_s5 = scalar_lea.sflag [#allocation3], %s148_s27  ;;  %s717_s6 = scalar_lea.hbm %s949_s4, 2048 }
  0x32   : > { %p718_p13 = scmp.ne.s32.totalorder %s949_s4, %s717_s6  ;;  %p719_p0 = pneg %p951_p11 }
  0x33   : > { %s722_s9 = scalar_lea.hbm %s1159_s0, 4096  ;;  %p723_p7 = scmp.lt.u32.totalorder %s949_s4, %s1159_s0 }
  0x34   : > { %p720_p3 = pnand %p719_p0, %p718_p13  ;;  %p724_p9 = scmp.lt.u32.totalorder %s722_s9, %s717_s6 }
  0x35   : > { %p726_p1 = scmp.lt.u32.totalorder %s717_s6, %s949_s4 }
  0x36   : > { %p721_p5 = pneg %p720_p3  ;;  %p725_p2 = por %p724_p9, %p723_p7 }
  0x38   : > { %p727_p4 = por %p726_p1, %p725_p2 }
  0x3a   : > { %p728_p6 = pnand %p727_p4, %p721_p5 }
  0x3c   : > { %731 = shalt.err (!%p728_p6)
}
  0x3d   : > { %s732_s27 = scalar_lea.vmem %s955_s25, 2048  ;;  %s822_s28 = smov [#allocation2]  }
  0x3e   : > { %p733_p8 = scmp.ne.s32.totalorder %s955_s25, %s732_s27  ;;  %s737_s29 = sshll.u32 %s822_s28, 4  ;;  %s738_s29 = int_to_ptr.vmem [resolvable:$false] %s737_s29 }
  0x3f   : > { %s739_s23 = scalar_lea.vmem %s738_s29, 4096  ;;  %p740_p3 = scmp.lt.s32.totalorder %s955_s25, %s738_s29 }
  0x40   : > { %p735_p10 = pnand %p733_p8, %p719_p0  ;;  %p741_p7 = scmp.lt.s32.totalorder %s739_s23, %s732_s27 }
  0x42   : > { %p736_p13 = pneg %p735_p10  ;;  %p742_p9 = por %p741_p7, %p740_p3 }
  0x44   : > { %p743_p2 = pnand %p742_p9, %p736_p13 }
  0x46   : > { %746 = shalt.err (!%p743_p2)
}
  0x47   : > { %s823_s30 = smov 128   ;;  %s824_s22 = smov 8  }
  0x48   : > { %640 = dma.hbm_to_vmem [thread:$0]  (!%p951_p11), %s949_s4, 2048, %s955_s25, %s957_s5, %s823_s30, %s823_s30, %s824_s22  }
  0x49   : > { %p1173_p0 = scmp.ne.s32.totalorder %s1168_s20, 0 }
  0x4a   : > { %s988_s6 = sand.u32 (!%p1173_p0), 1, %s809_s13   ;;  %p1174_p5 = scmp.ne.s32.totalorder (!%p1173_p0), %s1166_s18, 0 }
  0x4b   : > { %171 = sbr.rel (%p1173_p0) target bundleno = 379 (0x17b), region = 32  ;;  %s565_s7 = sshll.u32 (!%p1173_p0), %s988_s6, 7 }
  0x4c   : > { %s174_s8 = scalar_lea.sflag (!%p1173_p0), [#allocation3], %s988_s6  ;;  %s992_s9 = scalar_lea.vmem (!%p1173_p0), [#allocation2], %s565_s7 }
  0x52   : > { %792 = dma.done.wait (%p1174_p5), %s174_s8, 2048  }
  0x53   : > { %794 = vsyncadd (%p1174_p5), %s174_s8, 4294965248  ;;  %p1175_p11 = scmp.eq.s32.totalorder %s870_s16, 0 }
  0x55   : > { %796 = dma.done.wait (%p1175_p11), [#allocation6], 4096   ;;  %p1176_p1 = pmov %p1175_p11 }
  0x56   : > { %v825_v0 = vmov 0.0   ;;  %v223_v1 = vld [vmem:[#allocation5 + $0x8] sm:$0xff]  ;;  %v225_v2 = vld [vmem:[#allocation5 + $0x18] sm:$0xff]  ;;  %v222_v3 = vld [vmem:[#allocation5] sm:$0xff]  ;;  %s567_s4 = sshll.u32 %s988_s6, 8  ;;  %s576_s26 = sshll.u32 %s870_s16, 12 }
  0x57   : > { %798 = vsyncadd (%p1176_p1), [#allocation6], 4294963200  ;;  %330 = vmatprep.mubr.f32.mxu0 %v825_v0  ;;  %378 = vmatprep.mubr.f32.mxu1 %v825_v0  ;;  %v577_v4 = vpack.c.bf16 %v225_v2, %v223_v1  ;;  %v224_v5 = vld [vmem:[#allocation5 + $0x10] sm:$0xff]  ;;  %v227_v6 = vld [vmem:[#allocation5 + $0x28] sm:$0xff]  ;;  %v256_v2 = vlaneseq  ;;  %s1046_s25 = scalar_lea.vmem [#allocation7], %s567_s4  ;;  %s1107_s11 = scalar_lea.hbm %s1162_s3, %s576_s26 }
  0x58   : > { %v229_v7 = vld [vmem:[#allocation5 + $0x38] sm:$0xff]  ;;  %v579_v8 = vpack.c.bf16 %v224_v5, %v222_v3  ;;  %v226_v10 = vld [vmem:[#allocation5 + $0x20] sm:$0xff]  ;;  %v228_v11 = vld [vmem:[#allocation5 + $0x30] sm:$0xff]  ;;  %s474_s5 = sshll.u32 %s1046_s25, 4  ;;  %s460_s27 = scalar_lea.sflag [#allocation4], %s988_s6  ;;  %s1109_s5 = int_to_ptr.vmem [resolvable:$true] %s474_s5 }
  0x59   : > { %v581_v9 = vpack.c.bf16 %v229_v7, %v227_v6  ;;  %v231_v12 = vld [vmem:[#allocation5 + $0x48] sm:$0xff]  ;;  %578 = vmatprep.subr.bf16.mxu0 %v577_v4  ;;  %609 = vmatprep.subr.bf16.mxu1 %v577_v4  ;;  %v233_v13 = vld [vmem:[#allocation5 + $0x58] sm:$0xff]  ;;  %v583_v14 = vpack.c.bf16 %v228_v11, %v226_v10  ;;  %v230_v16 = vld [vmem:[#allocation5 + $0x40] sm:$0xff]  ;;  %v257_v3 = vshrl.u32 %v256_v2, 7  ;;  %s747_s28 = scalar_lea.vmem %s1109_s5, 4096  ;;  %s826_s29 = smov [#allocation7]  }
  0x5a   : > { %580 = vmatpush1.bf16.msra.mxu0 %v579_v8  ;;  %617 = vmatpush1.bf16.msra.mxu1 %v579_v8  ;;  %v585_v15 = vpack.c.bf16 %v233_v13, %v231_v12  ;;  %v232_v17 = vld [vmem:[#allocation5 + $0x50] sm:$0xff]  ;;  %v235_v18 = vld [vmem:[#allocation5 + $0x68] sm:$0xff]  ;;  %v237_v19 = vld [vmem:[#allocation5 + $0x78] sm:$0xff]  ;;  %p748_p4 = scmp.ne.s32.totalorder %s1109_s5, %s747_s28  ;;  %s751_s23 = sshll.u32 %s826_s29, 4  ;;  %s752_s23 = int_to_ptr.vmem [resolvable:$false] %s751_s23 }
  0x5b   : > { %582 = vmatprep.subr.bf16.mxu0 %v581_v9  ;;  %610 = vmatprep.subr.bf16.mxu1 %v581_v9  ;;  %v587_v20 = vpack.c.bf16 %v232_v17, %v230_v16  ;;  %v589_v21 = vpack.c.bf16 %v237_v19, %v235_v18  ;;  %v234_v22 = vld [vmem:[#allocation5 + $0x60] sm:$0xff]  ;;  %v236_v23 = vld [vmem:[#allocation5 + $0x70] sm:$0xff]  ;;  %v239_v24 = vld [vmem:[#allocation5 + $0x88] sm:$0xff]  ;;  %v258_v4 = vsub.s32 0, %v257_v3  ;;  %v262_v6 = vsub.s32 1, %v257_v3  ;;  %s753_s30 = scalar_lea.vmem %s752_s23, 8192  ;;  %p754_p10 = scmp.lt.s32.totalorder %s1109_s5, %s752_s23 }
  0x5c   : > { %v241_v25 = vld [vmem:[#allocation5 + $0x98] sm:$0xff]  ;;  %v591_v26 = vpack.c.bf16 %v236_v23, %v234_v22  ;;  %v238_v28 = vld [vmem:[#allocation5 + $0x80] sm:$0xff]  ;;  %v240_v29 = vld [vmem:[#allocation5 + $0x90] sm:$0xff]  ;;  %p749_p6 = pnand %p748_p4, %p940_p12  ;;  %p755_p13 = scmp.lt.s32.totalorder %s753_s30, %s747_s28 }
  0x5d   : > { %v593_v27 = vpack.c.bf16 %v241_v25, %v239_v24  ;;  %v243_v30 = vld [vmem:[#allocation5 + $0xa8] sm:$0xff]  ;;  %v245_v31 = vld [vmem:[#allocation5 + $0xb8] sm:$0xff]  ;;  %v595_v32 = vpack.c.bf16 %v240_v29, %v238_v28  ;;  %v242_v34 = vld [vmem:[#allocation5 + $0xa0] sm:$0xff] }
  0x5e   : > { %584 = vmatpush1.bf16.msra.mxu0 %v583_v14  ;;  %618 = vmatpush1.bf16.msra.mxu1 %v583_v14  ;;  %v597_v33 = vpack.c.bf16 %v245_v31, %v243_v30  ;;  %v244_v35 = vld [vmem:[#allocation5 + $0xb0] sm:$0xff]  ;;  %v247_v36 = vld [vmem:[#allocation5 + $0xc8] sm:$0xff]  ;;  %v249_v37 = vld [vmem:[#allocation5 + $0xd8] sm:$0xff]  ;;  %p750_p8 = pneg %p749_p6  ;;  %p756_p3 = por %p755_p13, %p754_p10 }
  0x5f   : > { %586 = vmatprep.subr.bf16.mxu0 %v585_v15  ;;  %611 = vmatprep.subr.bf16.mxu1 %v585_v15  ;;  %v599_v38 = vpack.c.bf16 %v244_v35, %v242_v34  ;;  %v601_v39 = vpack.c.bf16 %v249_v37, %v247_v36  ;;  %v246_v40 = vld [vmem:[#allocation5 + $0xc0] sm:$0xff]  ;;  %v248_v41 = vld [vmem:[#allocation5 + $0xd0] sm:$0xff]  ;;  %v251_v42 = vld [vmem:[#allocation5 + $0xe8] sm:$0xff] }
  0x60   : > { %v253_v43 = vld [vmem:[#allocation5 + $0xf8] sm:$0xff]  ;;  %v603_v44 = vpack.c.bf16 %v248_v41, %v246_v40  ;;  %v250_v46 = vld [vmem:[#allocation5 + $0xe0] sm:$0xff]  ;;  %v252_v47 = vld [vmem:[#allocation5 + $0xf0] sm:$0xff]  ;;  %p757_p7 = pnand %p756_p3, %p750_p8 }
  0x61   : > { %v605_v45 = vpack.c.bf16 %v253_v43, %v251_v42  ;;  %v607_v48 = vpack.c.bf16 %v252_v47, %v250_v46  ;;  %v206_v49 = vld [vmem:[%s992_s9] sm:$0xff]  ;;  %v207_v51 = vld [vmem:[%s992_s9 + $0x8] sm:$0xff]  ;;  %v208_v53 = vld [vmem:[%s992_s9 + $0x10] sm:$0xff] }
  0x62   : > { %588 = vmatpush1.bf16.msra.mxu0 %v587_v20  ;;  %619 = vmatpush1.bf16.msra.mxu1 %v587_v20  ;;  %v214_v50 = vld [vmem:[%s992_s9 + $0x40] sm:$0xff]  ;;  %v215_v52 = vld [vmem:[%s992_s9 + $0x48] sm:$0xff]  ;;  %v216_v54 = vld [vmem:[%s992_s9 + $0x50] sm:$0xff] }
  0x63   : > { %590 = vmatprep.subr.bf16.mxu0 %v589_v21  ;;  %612 = vmatprep.subr.bf16.mxu1 %v589_v21  ;;  %v209_v55 = vld [vmem:[%s992_s9 + $0x18] sm:$0xff]  ;;  %v210_v57 = vld [vmem:[%s992_s9 + $0x20] sm:$0xff]  ;;  %v211_v59 = vld [vmem:[%s992_s9 + $0x28] sm:$0xff] }
  0x64   : > { %v217_v56 = vld [vmem:[%s992_s9 + $0x58] sm:$0xff]  ;;  %v218_v58 = vld [vmem:[%s992_s9 + $0x60] sm:$0xff]  ;;  %v219_v60 = vld [vmem:[%s992_s9 + $0x68] sm:$0xff] }
  0x65   : > { %v212_v61 = vld [vmem:[%s992_s9 + $0x30] sm:$0xff]  ;;  %v213_v63 = vld [vmem:[%s992_s9 + $0x38] sm:$0xff]  ;;  %v254_v5 = vld [vmem:[%s1161_s2] sm:$0x3] }
  0x66   : > { %592 = vmatpush1.bf16.msra.mxu0 %v591_v26  ;;  %620 = vmatpush1.bf16.msra.mxu1 %v591_v26  ;;  %v220_v62 = vld [vmem:[%s992_s9 + $0x70] sm:$0xff]  ;;  %v221_v1 = vld [vmem:[%s992_s9 + $0x78] sm:$0xff]  ;;  %v1038_v7 = vrot.slane %v254_v5, %v258_v4  ;;  %v1040_v8 = vrot.slane %v254_v5, %v262_v6 }
  0x67   : > { %594 = vmatprep.subr.bf16.mxu0 %v593_v27  ;;  %613 = vmatprep.subr.bf16.mxu1 %v593_v27 }
  0x6a   : > { %596 = vmatpush1.bf16.msra.mxu0 %v595_v32  ;;  %621 = vmatpush1.bf16.msra.mxu1 %v595_v32 }
  0x6b   : > { %598 = vmatprep.subr.bf16.mxu0 %v597_v33  ;;  %614 = vmatprep.subr.bf16.mxu1 %v597_v33 }
  0x6e   : > { %600 = vmatpush1.bf16.msra.mxu0 %v599_v38  ;;  %622 = vmatpush1.bf16.msra.mxu1 %v599_v38 }
  0x6f   : > { %602 = vmatprep.subr.bf16.mxu0 %v601_v39  ;;  %615 = vmatprep.subr.bf16.mxu1 %v601_v39 }
  0x72   : > { %604 = vmatpush1.bf16.msra.mxu0 %v603_v44  ;;  %623 = vmatpush1.bf16.msra.mxu1 %v603_v44 }
  0x73   : > { %606 = vmatprep.subr.bf16.mxu0 %v605_v45  ;;  %616 = vmatprep.subr.bf16.mxu1 %v605_v45 }
  0x76   : > { %608 = vmatpush1.bf16.msra.mxu0 %v607_v48  ;;  %624 = vmatpush1.bf16.msra.mxu1 %v607_v48 }
  0x79   : > { %331 = vmatmul.mubr.f32.vlgmr.msra.gmra.mrb[0].mxu0 %v206_v49  ;;  %379 = vmatmul.mubr.f32.vlgmr.msra.gmra.mrb[0].mxu1 %v214_v50 }
  0x7a   : > { %336 = vmatprep.mubr.f32.mxu0 %v825_v0  ;;  %384 = vmatprep.mubr.f32.mxu1 %v825_v0 }
  0x7d   : > { %337 = vmatmul.mubr.f32.gmra.mrb[2].mxu0 %v207_v51  ;;  %385 = vmatmul.mubr.f32.gmra.mrb[2].mxu1 %v215_v52 }
  0x7e   : > { %342 = vmatprep.mubr.f32.mxu0 %v825_v0  ;;  %390 = vmatprep.mubr.f32.mxu1 %v825_v0 }
  0x81   : > { %343 = vmatmul.mubr.f32.gmra.mrb[4].mxu0 %v208_v53  ;;  %391 = vmatmul.mubr.f32.gmra.mrb[4].mxu1 %v216_v54 }
  0x82   : > { %348 = vmatprep.mubr.f32.mxu0 %v825_v0  ;;  %396 = vmatprep.mubr.f32.mxu1 %v825_v0 }
  0x85   : > { %349 = vmatmul.mubr.f32.gmra.mrb[6].mxu0 %v209_v55  ;;  %397 = vmatmul.mubr.f32.gmra.mrb[6].mxu1 %v217_v56 }
  0x86   : > { %354 = vmatprep.mubr.f32.mxu0 %v825_v0  ;;  %402 = vmatprep.mubr.f32.mxu1 %v825_v0 }
  0x89   : > { %355 = vmatmul.mubr.f32.gmra.mrb[8].mxu0 %v210_v57  ;;  %403 = vmatmul.mubr.f32.gmra.mrb[8].mxu1 %v218_v58 }
  0x8a   : > { %360 = vmatprep.mubr.f32.mxu0 %v825_v0  ;;  %408 = vmatprep.mubr.f32.mxu1 %v825_v0 }
  0x8d   : > { %361 = vmatmul.mubr.f32.gmra.mrb[10].mxu0 %v211_v59  ;;  %409 = vmatmul.mubr.f32.gmra.mrb[10].mxu1 %v219_v60 }
  0x8e   : > { %366 = vmatprep.mubr.f32.mxu0 %v825_v0  ;;  %414 = vmatprep.mubr.f32.mxu1 %v825_v0 }
  0x91   : > { %367 = vmatmul.mubr.f32.gmra.mrb[12].mxu0 %v212_v61  ;;  %415 = vmatmul.mubr.f32.gmra.mrb[12].mxu1 %v220_v62 }
  0x92   : > { %372 = vmatprep.mubr.f32.mxu0 %v825_v0  ;;  %420 = vmatprep.mubr.f32.mxu1 %v825_v0 }
  0x95   : > { %373 = vmatmul.mubr.f32.gmra.mrb[14].mxu0 %v213_v63  ;;  %421 = vmatmul.mubr.f32.gmra.mrb[14].mxu1 %v221_v1 }
 0x14c   : > { %v332_v9 = vpop.f32.mrb[0].mxu0  ;;  %v380_v10 = vpop.f32.mrb[0].mxu1 }
 0x14d   : > { %v333_v0 = vadd.f32 %v332_v9, %v1038_v7  ;;  %v381_v11 = vadd.f32 %v380_v10, %v1038_v7  ;;  %v334_v12 = vpop.f32.mrb[1].mxu0  ;;  %v382_v13 = vpop.f32.mrb[1].mxu1 }
 0x14e   : > { %v335_v14 = vadd.f32 %v334_v12, %v1040_v8  ;;  %v383_v15 = vadd.f32 %v382_v13, %v1040_v8 }
 0x14f   : > { %427 = vst [vmem:[%s1046_s25] sm:$0xff] %v333_v0  ;;  %443 = vst [vmem:[%s1046_s25 + $0x80] sm:$0xff] %v381_v11 }
 0x150   : > { %428 = vst [vmem:[%s1046_s25 + $0x8] sm:$0xff] %v335_v14  ;;  %444 = vst [vmem:[%s1046_s25 + $0x88] sm:$0xff] %v383_v15  ;;  %v338_v16 = vpop.f32.mrb[2].mxu0  ;;  %v386_v17 = vpop.f32.mrb[2].mxu1 }
 0x151   : > { %v339_v18 = vadd.f32 %v338_v16, %v1038_v7  ;;  %v387_v19 = vadd.f32 %v386_v17, %v1038_v7  ;;  %v340_v20 = vpop.f32.mrb[3].mxu0  ;;  %v388_v21 = vpop.f32.mrb[3].mxu1 }
 0x152   : > { %v341_v22 = vadd.f32 %v340_v20, %v1040_v8  ;;  %v389_v23 = vadd.f32 %v388_v21, %v1040_v8 }
 0x153   : > { %429 = vst [vmem:[%s1046_s25 + $0x10] sm:$0xff] %v339_v18  ;;  %445 = vst [vmem:[%s1046_s25 + $0x90] sm:$0xff] %v387_v19 }
 0x154   : > { %430 = vst [vmem:[%s1046_s25 + $0x18] sm:$0xff] %v341_v22  ;;  %446 = vst [vmem:[%s1046_s25 + $0x98] sm:$0xff] %v389_v23  ;;  %v344_v24 = vpop.f32.mrb[4].mxu0  ;;  %v392_v25 = vpop.f32.mrb[4].mxu1 }
 0x155   : > { %v345_v26 = vadd.f32 %v344_v24, %v1038_v7  ;;  %v393_v27 = vadd.f32 %v392_v25, %v1038_v7  ;;  %v346_v28 = vpop.f32.mrb[5].mxu0  ;;  %v394_v29 = vpop.f32.mrb[5].mxu1 }
 0x156   : > { %v347_v30 = vadd.f32 %v346_v28, %v1040_v8  ;;  %v395_v31 = vadd.f32 %v394_v29, %v1040_v8 }
 0x157   : > { %431 = vst [vmem:[%s1046_s25 + $0x20] sm:$0xff] %v345_v26  ;;  %447 = vst [vmem:[%s1046_s25 + $0xa0] sm:$0xff] %v393_v27 }
 0x158   : > { %432 = vst [vmem:[%s1046_s25 + $0x28] sm:$0xff] %v347_v30  ;;  %448 = vst [vmem:[%s1046_s25 + $0xa8] sm:$0xff] %v395_v31  ;;  %v350_v32 = vpop.f32.mrb[6].mxu0  ;;  %v398_v33 = vpop.f32.mrb[6].mxu1 }
 0x159   : > { %v351_v34 = vadd.f32 %v350_v32, %v1038_v7  ;;  %v399_v35 = vadd.f32 %v398_v33, %v1038_v7  ;;  %v352_v36 = vpop.f32.mrb[7].mxu0  ;;  %v400_v37 = vpop.f32.mrb[7].mxu1 }
 0x15a   : > { %v353_v38 = vadd.f32 %v352_v36, %v1040_v8  ;;  %v401_v39 = vadd.f32 %v400_v37, %v1040_v8 }
 0x15b   : > { %433 = vst [vmem:[%s1046_s25 + $0x30] sm:$0xff] %v351_v34  ;;  %449 = vst [vmem:[%s1046_s25 + $0xb0] sm:$0xff] %v399_v35 }
 0x15c   : > { %434 = vst [vmem:[%s1046_s25 + $0x38] sm:$0xff] %v353_v38  ;;  %450 = vst [vmem:[%s1046_s25 + $0xb8] sm:$0xff] %v401_v39  ;;  %v356_v40 = vpop.f32.mrb[8].mxu0  ;;  %v404_v41 = vpop.f32.mrb[8].mxu1 }
 0x15d   : > { %v357_v42 = vadd.f32 %v356_v40, %v1038_v7  ;;  %v405_v43 = vadd.f32 %v404_v41, %v1038_v7  ;;  %v358_v44 = vpop.f32.mrb[9].mxu0  ;;  %v406_v45 = vpop.f32.mrb[9].mxu1 }
 0x15e   : > { %v359_v46 = vadd.f32 %v358_v44, %v1040_v8  ;;  %v407_v47 = vadd.f32 %v406_v45, %v1040_v8 }
 0x15f   : > { %435 = vst [vmem:[%s1046_s25 + $0x40] sm:$0xff] %v357_v42  ;;  %451 = vst [vmem:[%s1046_s25 + $0xc0] sm:$0xff] %v405_v43 }
 0x160   : > { %436 = vst [vmem:[%s1046_s25 + $0x48] sm:$0xff] %v359_v46  ;;  %452 = vst [vmem:[%s1046_s25 + $0xc8] sm:$0xff] %v407_v47  ;;  %v362_v48 = vpop.f32.mrb[10].mxu0  ;;  %v410_v49 = vpop.f32.mrb[10].mxu1 }
 0x161   : > { %v363_v50 = vadd.f32 %v362_v48, %v1038_v7  ;;  %v411_v51 = vadd.f32 %v410_v49, %v1038_v7  ;;  %v364_v52 = vpop.f32.mrb[11].mxu0  ;;  %v412_v53 = vpop.f32.mrb[11].mxu1 }
 0x162   : > { %v365_v54 = vadd.f32 %v364_v52, %v1040_v8  ;;  %v413_v55 = vadd.f32 %v412_v53, %v1040_v8 }
 0x163   : > { %437 = vst [vmem:[%s1046_s25 + $0x50] sm:$0xff] %v363_v50  ;;  %453 = vst [vmem:[%s1046_s25 + $0xd0] sm:$0xff] %v411_v51 }
 0x164   : > { %438 = vst [vmem:[%s1046_s25 + $0x58] sm:$0xff] %v365_v54  ;;  %454 = vst [vmem:[%s1046_s25 + $0xd8] sm:$0xff] %v413_v55  ;;  %v368_v56 = vpop.f32.mrb[12].mxu0  ;;  %v416_v57 = vpop.f32.mrb[12].mxu1 }
 0x165   : > { %v369_v58 = vadd.f32 %v368_v56, %v1038_v7  ;;  %v417_v59 = vadd.f32 %v416_v57, %v1038_v7  ;;  %v370_v60 = vpop.f32.mrb[13].mxu0  ;;  %v418_v61 = vpop.f32.mrb[13].mxu1 }
 0x166   : > { %v371_v62 = vadd.f32 %v370_v60, %v1040_v8  ;;  %v419_v63 = vadd.f32 %v418_v61, %v1040_v8 }
 0x167   : > { %439 = vst [vmem:[%s1046_s25 + $0x60] sm:$0xff] %v369_v58  ;;  %455 = vst [vmem:[%s1046_s25 + $0xe0] sm:$0xff] %v417_v59 }
 0x168   : > { %440 = vst [vmem:[%s1046_s25 + $0x68] sm:$0xff] %v371_v62  ;;  %456 = vst [vmem:[%s1046_s25 + $0xe8] sm:$0xff] %v419_v63  ;;  %v374_v1 = vpop.f32.mrb[14].mxu0  ;;  %v422_v2 = vpop.f32.mrb[14].mxu1 }
 0x169   : > { %v375_v3 = vadd.f32 %v374_v1, %v1038_v7  ;;  %v423_v4 = vadd.f32 %v422_v2, %v1038_v7  ;;  %v376_v5 = vpop.f32.mrb[15].mxu0  ;;  %v424_v6 = vpop.f32.mrb[15].mxu1 }
 0x16a   : > { %v377_v9 = vadd.f32 %v376_v5, %v1040_v8  ;;  %v425_v10 = vadd.f32 %v424_v6, %v1040_v8 }
 0x16b   : > { %441 = vst [vmem:[%s1046_s25 + $0x70] sm:$0xff] %v375_v3  ;;  %457 = vst [vmem:[%s1046_s25 + $0xf0] sm:$0xff] %v423_v4 }
 0x16c   : > { %442 = vst [vmem:[%s1046_s25 + $0x78] sm:$0xff] %v377_v9  ;;  %458 = vst [vmem:[%s1046_s25 + $0xf8] sm:$0xff] %v425_v10 }
 0x16d   : > { %760 = shalt.err (!%p757_p7)
}
 0x16e   : > { %s761_s22 = scalar_lea.hbm %s1107_s11, 4096  ;;  %s765_s9 = scalar_lea.hbm %s1162_s3, 8192 }
 0x16f   : > { %p762_p9 = scmp.ne.s32.totalorder %s1107_s11, %s761_s22  ;;  %p766_p5 = scmp.lt.u32.totalorder %s1107_s11, %s1162_s3 }
 0x170   : > { %p767_p11 = scmp.lt.u32.totalorder %s765_s9, %s761_s22  ;;  %p769_p4 = scmp.lt.u32.totalorder %s761_s22, %s1107_s11 }
 0x171   : > { %p763_p2 = pnand %p762_p9, %p940_p12 }
 0x172   : > { %p768_p1 = por %p767_p11, %p766_p5 }
 0x173   : > { %p764_p0 = pneg %p763_p2 }
 0x174   : > { %p770_p6 = por %p769_p4, %p768_p1 }
 0x176   : > { %p771_p8 = pnand %p770_p6, %p764_p0 }
 0x178   : > { %774 = shalt.err (!%p771_p8)
}
 0x179   : > { %s827_s4 = smov 256   ;;  %s828_s25 = smov 16  }
 0x17a   : > { %631 = dma.vmem_to_hbm [thread:$0]  (%p940_p12), %s1109_s5, 4096, %s1107_s11, %s460_s27, %s827_s4, %s827_s4, %s828_s25  }
 0x17b PF: > { %s489_s26 = sand.u32 1, %s805_s12   ;;  %p1177_p10 = scmp.ne.s32.totalorder %s1167_s19, 0 }
 0x17c   : > { %p1178_p13 = scmp.ge.s32.totalorder %s817_s15, 2  ;;  %s490_s16 = scalar_lea.sflag [#allocation4], %s489_s26 }
 0x17e   : > { %p642_p3 = pnand %p1178_p13, %p1177_p10 }
 0x180   : > { %800 = dma.done.wait (!%p642_p3), %s490_s16, 4096  }
 0x181   : > { %802 = vsyncadd (!%p642_p3), %s490_s16, 4294963200  ;;  %p17_p7 = scmp.ge.s32.totalorder %s905_s24, 4   ;;  %s1179_s12 = smov %s809_s13 }
 0x182   : > { %s1180_s13 = smov %s813_s14  ;;  %s1181_s14 = smov %s936_s17 }
 0x183   : > { %s1182_s15 = smov %s905_s24  ;;  %19 = sbr.rel (!%p17_p7) target bundleno = 6 (0x6), region = 81 }
 0x18a   :  { %495 = vsyncpa [#allocation3], 1 }
 0x18b   :  { %497 = vsyncpa [#allocation3 + $0x1], 1 }
 0x18c   :  { %498 = vsyncpa [#allocation6], 1 }
 0x18d   :  { %499 = vsyncpa [#allocation4], 1 }
 0x18e   :  { %501 = vsyncpa [#allocation4 + $0x1], 1 }

</bundles_post_ra>
